<compile_context>
chip_gen: v7x
topology: tpu7x:2x2x1
jax: 0.10.0
libtpu: 0.0.40
codegen_flags: <defaults>
</compile_context>

<pallas_src>
import jax
import jax.numpy as jnp
from jax.experimental import pallas as pl
from jax.experimental.pallas import tpu as pltpu


_LANE = 128  # lanes per vreg row / rows packed per lane-dense output row


def _round_up(x, m):
    return ((x + m - 1) // m) * m


def _sublane_packing(dtype):
    # sublane packing of the (rows, 128) tile: f32 -> 8, bf16 -> 16, int8 -> 32
    return max(8, 32 // jnp.dtype(dtype).itemsize)


def _vmem_capacity_bytes():
    try:
        cap = getattr(pltpu.get_tpu_info(), "vmem_capacity_bytes", None)
        if cap:
            return int(cap)
    except Exception:
        pass
    return 64 * 1024 * 1024  # conservative default (v7x per-core VMEM)


def _choose_row_tile(n_rows, budget_rows, packing):
    """Rows per grid step: a multiple of `packing` (or == n_rows); keeps >= 2
    grid steps when there is enough work (megacore sharding + pipelining)."""
    if n_rows <= packing:
        return n_rows
    cap = min(max(budget_rows, 1), n_rows)
    if budget_rows >= n_rows and n_rows >= 2 * packing:
        cap = min(cap, pl.cdiv(n_rows, 2))       # avoid a one-step grid
    tile = max(packing, (cap // packing) * packing)
    return min(tile, (n_rows // packing) * packing)


def _diag_metric_kernel(x_ref, inv_var_ref, o_ref, acc_ref):
    """General path.
    x_ref:       (tile_g, 128, tile_d)  -- 128 rows of x per slab
    inv_var_ref: (1, 1, tile_d)         -- f32, VMEM resident across rows
    o_ref:       (tile_g, 128)          -- lane-dense per-row results
    acc_ref:     (tile_g, 128) f32 scratch accumulator over D chunks."""
    k = pl.program_id(1)

    @pl.when(k == 0)
    def _():
        acc_ref[...] = jnp.zeros_like(acc_ref)

    x = x_ref[...].astype(jnp.float32)          # f32 accumulate for any input dtype
    iv = inv_var_ref[...]                       # (1, 1, tile_d) f32
    acc_ref[...] += jnp.sum((x * x) * iv, axis=-1)

    @pl.when(k == pl.num_programs(1) - 1)
    def _():
        o_ref[...] = acc_ref[...].astype(o_ref.dtype)


def _diag_metric_packed_kernel(x_ref, inv_var_ref, sum_ref, o_ref):
    """Small-D lane-packing path (P = 128 // D original rows per packed row).
    x_ref:       (tile_m, 128)  -- lane-dense packed rows
    inv_var_ref: (1, 128)       -- inv_var tiled P times across lanes
    sum_ref:     (128, P)       -- block-summing matrix (f32)
    o_ref:       (tile_m, P)"""
    x = x_ref[...].astype(jnp.float32)
    v = (x * x) * inv_var_ref[...]
    # Segmented lane reduction on the otherwise-idle MXU.
    o_ref[...] = jnp.dot(v, sum_ref[...],
                         preferred_element_type=jnp.float32).astype(o_ref.dtype)


def diagonal_metric(x, inv_var, *, vmem_budget_bytes=None):
    """out[n] = sum_d inv_var[d] * x[n, d]**2  (== (x * (inv_var * x)).sum(-1))."""
    N, D = x.shape
    assert inv_var.shape == (D,)
    out_dtype = x.dtype
    in_item = jnp.dtype(x.dtype).itemsize
    out_item = jnp.dtype(out_dtype).itemsize
    pack_in = _sublane_packing(x.dtype)
    pack_out = _sublane_packing(out_dtype)

    vmem_cap = _vmem_capacity_bytes()
    if vmem_budget_bytes is None:
        # ~3/4 of physical VMEM for the pipelined working set, clamped:
        # v7x -> 48 MiB, v5e/v6e -> 96 MiB.  The per-tile accounting below is
        # conservative (lane padding + f32 cast/product intermediates).
        work_budget = min((vmem_cap * 3) // 4, 96 * 1024 * 1024)
    else:
        work_budget = int(vmem_budget_bytes)

    iv_f32 = inv_var.astype(jnp.float32)

    # ---------------- Small-D lane-packing fast path ----------------
    if N > 0 and D <= 64 and _LANE % D == 0 and N % (_LANE // D) == 0:
        P = _LANE // D
        M = N // P
        xp = x.reshape(M, _LANE)                         # free contiguous bitcast
        iv_tiled = jnp.tile(iv_f32, P).reshape(1, _LANE)
        # (128, P) block-summing matrix: column p sums lanes [p*D, (p+1)*D).
        seg = jax.lax.broadcasted_iota(jnp.int32, (_LANE, P), 0) // D
        col = jax.lax.broadcasted_iota(jnp.int32, (_LANE, P), 1)
        sum_mat = (seg == col).astype(jnp.float32)

        # Conservative VMEM bytes per packed row: double-buffered input + f32
        # intermediates + lane-padded, double-buffered output.
        row_bytes = _LANE * (2 * in_item + 8) + _LANE * (2 * out_item + 4)
        budget_rows = max(1, work_budget // row_bytes)
        tile_m = _choose_row_tile(M, budget_rows, max(pack_in, pack_out))
        num_tiles = pl.cdiv(M, tile_m)

        work_bytes = tile_m * row_bytes + 2 * _LANE * 4 + _LANE * P * 4
        vmem_limit = max(32 * 1024 * 1024,
                         min(vmem_cap - 2 * 1024 * 1024,
                             work_bytes + 16 * 1024 * 1024))

        out = pl.pallas_call(
            _diag_metric_packed_kernel,
            out_shape=jax.ShapeDtypeStruct((M, P), out_dtype),
            grid=(num_tiles,),
            in_specs=[
                pl.BlockSpec((tile_m, _LANE), lambda i: (i, 0)),
                pl.BlockSpec((1, _LANE), lambda i: (0, 0)),     # VMEM resident
                pl.BlockSpec((_LANE, P), lambda i: (0, 0)),     # VMEM resident
            ],
            out_specs=pl.BlockSpec((tile_m, P), lambda i: (i, 0)),
            compiler_params=pltpu.CompilerParams(
                dimension_semantics=("parallel",),
                vmem_limit_bytes=int(vmem_limit),
            ),
        )(xp, iv_tiled, sum_mat)
        return out.reshape(N)

    # ---------------- General path: (n_slabs, 128, D) slabs ----------------
    n_slabs = pl.cdiv(N, _LANE)
    n_rows_slab = n_slabs * _LANE
    if n_rows_slab != N:
        # TODO(synk): this full-copy pad only triggers when N % 128 != 0; a 2-D
        # BlockSpec with an in-kernel slab reshape would avoid it entirely.
        x = jnp.pad(x, ((0, n_rows_slab - N), (0, 0)))
    x3 = x.reshape(n_slabs, _LANE, D)                    # free contiguous bitcast
    iv3 = iv_f32.reshape(1, 1, D)

    d_pad = _round_up(D, _LANE)

    def _slab_bytes(lanes_pad):
        # One 128-row slab: double-buffered (lane-padded) input + f32
        # cast/product intermediates + padded, double-buffered output + acc.
        return _LANE * lanes_pad * (2 * in_item + 8) + _LANE * (2 * out_item + 4)

    # Feature-axis chunking so even the minimum row tile fits the budget.
    if D <= _LANE or D % _LANE != 0 or _slab_bytes(d_pad) * pack_out <= work_budget:
        tile_d, num_d = D, 1
        # TODO(synk): huge D with D % 128 != 0 stays single-chunk here; a
        # masked ragged feature chunk would let it respect the byte budget too.
    else:
        base = D // _LANE
        c_max = max(1, work_budget // (pack_out * _slab_bytes(_LANE)))
        c = 1
        for cand in range(min(c_max, base), 0, -1):
            if base % cand == 0:
                c = cand
                break
        tile_d = _LANE * c
        num_d = D // tile_d

    tile_d_pad = d_pad if tile_d == D else tile_d
    budget_slabs = max(1, work_budget // _slab_bytes(tile_d_pad))
    tile_g = _choose_row_tile(n_slabs, budget_slabs, pack_out)
    num_g = pl.cdiv(n_slabs, tile_g)

    work_bytes = tile_g * _slab_bytes(tile_d_pad) + _LANE * tile_d_pad * 4
    vmem_limit = max(32 * 1024 * 1024,
                     min(vmem_cap - 2 * 1024 * 1024,
                         work_bytes + 16 * 1024 * 1024))

    out = pl.pallas_call(
        _diag_metric_kernel,
        out_shape=jax.ShapeDtypeStruct((n_slabs, _LANE), out_dtype),
        grid=(num_g, num_d),
        in_specs=[
            pl.BlockSpec((tile_g, _LANE, tile_d), lambda i, k: (i, 0, k)),
            pl.BlockSpec((1, 1, tile_d), lambda i, k: (0, 0, k)),
        ],
        out_specs=pl.BlockSpec((tile_g, _LANE), lambda i, k: (i, 0)),
        scratch_shapes=[pltpu.VMEM((tile_g, _LANE), jnp.float32)],
        compiler_params=pltpu.CompilerParams(
            dimension_semantics=("parallel", "arbitrary"),
            vmem_limit_bytes=int(vmem_limit),
        ),
    )(x3, iv3)

    return out.reshape(n_rows_slab)[:N]

    # TODO(synk): nn.Parameter bookkeeping / autograd of the torch module has
    # no kernel-side equivalent; only the forward math is implemented.


def _reference(x, inv_var):
    return jnp.sum(x * (inv_var[None, :] * x), axis=-1)


if __name__ == "__main__":
    key = jax.random.PRNGKey(0)
    k1, k2, k3, k4 = jax.random.split(key, 4)

    # Primary shapes consistent with the module: batch=8, hidden=32.
    N, D = 8, 32
    x = jax.random.normal(k1, (N, D), dtype=jnp.float32)
    # Deterministic parameter init (the module's `scale` path): inv_var = 1/scale^2.
    scale = 0.5 + jnp.arange(D, dtype=jnp.float32) / D
    inv_var = 1.0 / (scale ** 2)

    out = diagonal_metric(x, inv_var)
    jax.block_until_ready(out)
    assert out.shape == (N,)
    assert jnp.allclose(out, _reference(x, inv_var), rtol=1e-5, atol=1e-5)

    # Small-D packed path with a multi-step grid (no padding, lane-dense).
    N2 = 4096
    x2 = jax.random.normal(k2, (N2, D), dtype=jnp.float32)
    out2 = diagonal_metric(x2, inv_var)
    jax.block_until_ready(out2)
    assert out2.shape == (N2,)
    assert jnp.allclose(out2, _reference(x2, inv_var), rtol=1e-5, atol=1e-5)

    # General path: D not lane-packable, N not a multiple of 128 (slab pad).
    N3, D3 = 300, 96
    x3 = jax.random.normal(k3, (N3, D3), dtype=jnp.float32)
    scale3 = 0.5 + jnp.arange(D3, dtype=jnp.float32) / D3
    inv_var3 = 1.0 / (scale3 ** 2)
    out3 = diagonal_metric(x3, inv_var3)
    jax.block_until_ready(out3)
    assert out3.shape == (N3,)
    assert jnp.allclose(out3, _reference(x3, inv_var3), rtol=1e-5, atol=1e-5)

    # General path: ragged row tiles + feature-axis chunking (tiny budget).
    N4, D4 = 2176, 256
    x4 = jax.random.normal(k4, (N4, D4), dtype=jnp.float32)
    scale4 = 0.5 + jnp.arange(D4, dtype=jnp.float32) / D4
    inv_var4 = 1.0 / (scale4 ** 2)
    out4 = diagonal_metric(x4, inv_var4, vmem_budget_bytes=1 << 20)
    jax.block_until_ready(out4)
    assert out4.shape == (N4,)
    assert jnp.allclose(out4, _reference(x4, inv_var4), rtol=1e-5, atol=1e-5)

    print("KERNEL_OK")
</pallas_src>

<mosaic_0001>
module attributes {stable_mosaic.version = 11 : i64} {
  func.func @_diag_metric_packed_kernel(%arg0: i32, %arg1: memref<2x128xf32, #tpu.memory_space<vmem>>, %arg2: memref<1x128xf32, #tpu.memory_space<vmem>>, %arg3: memref<128x4xf32, #tpu.memory_space<vmem>>, %arg4: memref<2x4xf32, #tpu.memory_space<vmem>>) attributes {dimension_semantics = [#tpu.dimension_semantics<parallel>], iteration_bounds = array<i64: 1>, scalar_prefetch = 0 : i64, scratch_operands = 0 : i64, tpu.core_type = #tpu.core_type<tc>, window_params = [{transform_indices = @transform_0, window_bounds = array<i64: 2, 128>}, {pipeline_mode = #tpu.pipeline_mode<synchronous>, transform_indices = @transform_1, window_bounds = array<i64: 1, 128>}, {pipeline_mode = #tpu.pipeline_mode<synchronous>, transform_indices = @transform_2, window_bounds = array<i64: 128, 4>}, {transform_indices = @transform_3, window_bounds = array<i64: 2, 4>}]} {
    %c0 = arith.constant 0 : index
    %c0_0 = arith.constant 0 : index
    %0 = vector.load %arg1[%c0, %c0_0] : memref<2x128xf32, #tpu.memory_space<vmem>>, vector<2x128xf32>
    %1 = arith.mulf %0, %0 : vector<2x128xf32>
    %c0_1 = arith.constant 0 : index
    %c0_2 = arith.constant 0 : index
    %2 = vector.load %arg2[%c0_1, %c0_2] : memref<1x128xf32, #tpu.memory_space<vmem>>, vector<1x128xf32>
    %3 = vector.broadcast %2 : vector<1x128xf32> to vector<2x128xf32>
    %4 = arith.mulf %1, %3 : vector<2x128xf32>
    %c0_3 = arith.constant 0 : index
    %c0_4 = arith.constant 0 : index
    %5 = vector.load %arg3[%c0_3, %c0_4] : memref<128x4xf32, #tpu.memory_space<vmem>>, vector<128x4xf32>
    %cst = arith.constant dense<0.000000e+00> : vector<2x4xf32>
    %6 = tpu.matmul %4, %5, %cst {dimension_numbers = #tpu.dot_dimension_numbers<[1], [0], [0], [1], [0, 0, 1, 1], [], []>} : vector<2x128xf32>, vector<128x4xf32>, vector<2x4xf32> -> vector<2x4xf32>
    %c0_5 = arith.constant 0 : index
    %c0_6 = arith.constant 0 : index
    %7 = vector.load %arg4[%c0_5, %c0_6] : memref<2x4xf32, #tpu.memory_space<vmem>>, vector<2x4xf32>
    tpu.vector_store %arg4[%c0_5, %c0_6], %6 {strides = array<i32>} : memref<2x4xf32, #tpu.memory_space<vmem>>, vector<2x4xf32>,
    return
  }
  func.func @transform_0(%arg0: i32) -> (i32, i32) {
    %c0_i32 = arith.constant 0 : i32
    %c0_i32_0 = arith.constant 0 : i32
    return %arg0, %c0_i32 : i32, i32
  }
  func.func @transform_1(%arg0: i32) -> (i32, i32) {
    %c0_i32 = arith.constant 0 : i32
    %c0_i32_0 = arith.constant 0 : i32
    %c0_i32_1 = arith.constant 0 : i32
    return %c0_i32, %c0_i32_0 : i32, i32
  }
  func.func @transform_2(%arg0: i32) -> (i32, i32) {
    %c0_i32 = arith.constant 0 : i32
    %c0_i32_0 = arith.constant 0 : i32
    %c0_i32_1 = arith.constant 0 : i32
    return %c0_i32, %c0_i32_0 : i32, i32
  }
  func.func @transform_3(%arg0: i32) -> (i32, i32) {
    %c0_i32 = arith.constant 0 : i32
    %c0_i32_0 = arith.constant 0 : i32
    return %arg0, %c0_i32 : i32, i32
  }
}

</mosaic_0001>

<bundles_post_ra>
// kernel: tpu_custom_call.1
= control target key start
LH: loop header
LB: loop body
LE: loop exit
PB: predicated region body
PF: predicated region fallthrough
CT: control target
= control target key end

     0   :  { %v232_v3 = vmov 0.0|0.0   ;;  %vm233_vm0 = vmmov 0   ;;  %v234_v6 = vmov 0.0   ;;  %s322_s0 = inlined_call_operand.vmem [shape: f32[2,128], index: 0, kind: input, shape index: {}]   ;;  %s323_s1 = inlined_call_operand.vmem [shape: f32[1,128], index: 1, kind: input, shape index: {}]   ;;  %s324_s2 = inlined_call_operand.vmem [shape: f32[128,4], index: 2, kind: input, shape index: {}]   ;;  %s325_s3 = inlined_call_operand.hbm [shape: f32[2,4], index: 3, kind: output, shape index: {}]  }
   0x1   :  { %v25_v0 = vld [vmem:[%s324_s2] sm:$0xff]  ;;  %v26_v1 = vld [vmem:[%s324_s2 + $0x8] sm:$0xff]  ;;  %v27_v2 = vld [vmem:[%s324_s2 + $0x10] sm:$0xff]  ;;  %180 = vmatprep.subr.bf16.mxu0 %v232_v3  ;;  %177 = vmatprep.mubr.msk.f32.mxu0 %vm233_vm0, %v234_v6 }
   0x2   :  { %v181_v4 = vpack.c.bf16 %v26_v1, %v25_v0  ;;  %v28_v5 = vld [vmem:[%s324_s2 + $0x18] sm:$0xff]  ;;  %v29_v8 = vld [vmem:[%s324_s2 + $0x20] sm:$0xff]  ;;  %v30_v9 = vld [vmem:[%s324_s2 + $0x28] sm:$0xff] }
   0x3   :  { %v184_v7 = vpack.c.bf16 %v28_v5, %v27_v2 }
   0x4   :  { %182 = vmatpush3.bf16.msra.mxu0 %v181_v4 }
   0x5   :  { %183 = vmatprep.subr.bf16.mxu0 %v232_v3 }
   0x6   :  { %8 = vsyncpa [#allocation3], 0  ;;  %v187_v10 = vpack.c.bf16 %v30_v9, %v29_v8  ;;  %v31_v11 = vld [vmem:[%s324_s2 + $0x30] sm:$0xff]  ;;  %v32_v12 = vld [vmem:[%s324_s2 + $0x38] sm:$0xff]  ;;  %vm111_vm1 = vcmask 25600  }
   0x7   :  { %v190_v13 = vpack.c.bf16 %v32_v12, %v31_v11  ;;  %v33_v14 = vld [vmem:[%s324_s2 + $0x40] sm:$0xff]  ;;  %v34_v15 = vld [vmem:[%s324_s2 + $0x48] sm:$0xff]  ;;  %v35_v17 = vld [vmem:[%s324_s2 + $0x50] sm:$0xff] }
   0x8   :  { %185 = vmatpush3.bf16.msra.mxu0 %v184_v7  ;;  %v193_v16 = vpack.c.bf16 %v34_v15, %v33_v14  ;;  %v36_v18 = vld [vmem:[%s324_s2 + $0x58] sm:$0xff]  ;;  %v37_v20 = vld [vmem:[%s324_s2 + $0x60] sm:$0xff]  ;;  %v38_v21 = vld [vmem:[%s324_s2 + $0x68] sm:$0xff] }
   0x9   :  { %186 = vmatprep.subr.bf16.mxu0 %v232_v3  ;;  %v196_v19 = vpack.c.bf16 %v36_v18, %v35_v17  ;;  %v199_v22 = vpack.c.bf16 %v38_v21, %v37_v20  ;;  %v15_v23 = vld [vmem:[%s322_s0] sm:$0x3]  ;;  %v39_v24 = vld [vmem:[%s324_s2 + $0x70] sm:$0xff]  ;;  %v40_v25 = vld [vmem:[%s324_s2 + $0x78] sm:$0xff]  ;;  %s235_s0 = smov [#allocation2]  }
   0xa   :  { %v16_v26 = vmul.f32 %v15_v23, %v15_v23  ;;  %v202_v27 = vpack.c.bf16 %v40_v25, %v39_v24  ;;  %v127_v28 = vld [vmem:[%s323_s1] ss:$0 sm:$0xff]  ;;  %s119_s21 = sshll.u32 %s235_s0, 4  ;;  %s120_s21 = int_to_ptr.vmem [resolvable:$true] %s119_s21 }
   0xb   :  { %s208_s22 = scalar_lea.vmem %s120_s21, 32  ;;  %p213_p1 = scmp.lt.s32.totalorder %s120_s21, %s120_s21 }
   0xc   :  { %188 = vmatpush3.bf16.msra.mxu0 %v187_v10  ;;  %v24_v29 = vmul.f32 %v127_v28, %v16_v26  ;;  %p209_p0 = scmp.ne.s32.totalorder %s120_s21, %s208_s22  ;;  %p214_p2 = scmp.lt.s32.totalorder %s208_s22, %s208_s22 }
   0xd   :  { %189 = vmatprep.subr.bf16.mxu0 %v232_v3 }
   0xe   :  { %p215_p3 = por %p214_p2, %p213_p1 }
  0x10   :  { %191 = vmatpush3.bf16.msra.mxu0 %v190_v13  ;;  %p216_p4 = pnand %p215_p3, %p209_p0 }
  0x11   :  { %192 = vmatprep.subr.bf16.mxu0 %v232_v3 }
  0x14   :  { %194 = vmatpush3.bf16.msra.mxu0 %v193_v16 }
  0x15   :  { %195 = vmatprep.subr.bf16.mxu0 %v232_v3 }
  0x18   :  { %197 = vmatpush3.bf16.msra.mxu0 %v196_v19 }
  0x19   :  { %198 = vmatprep.subr.bf16.mxu0 %v232_v3 }
  0x1c   :  { %200 = vmatpush3.bf16.msra.mxu0 %v199_v22 }
  0x1d   :  { %201 = vmatprep.subr.bf16.mxu0 %v232_v3 }
  0x20   :  { %203 = vmatpush3.bf16.msra.mxu0 %v202_v27 }
  0x23   :  { %178 = vmatmul.mubr.f32.vlgmr.msra.gmra.mrb[0].mxu0 %v24_v29 }
  0xf6   :  { %v107_v30 = vpop.f32.mrb[0].mxu0 }
  0xf7   :  { %112 = vst.msk [vmem:[#allocation2] sm:$0x3] %vm111_vm1, %v107_v30  ;;  %v179_v31 = vpop.f32.mrb[1].mxu0 }
  0xf8   :  { %219 = shalt.err (!%p216_p4)
}
  0xf9   :  { %s220_s23 = scalar_lea.hbm %s325_s3, 32 }
  0xfa   :  { %p221_p5 = scmp.ne.s32.totalorder %s325_s3, %s220_s23  ;;  %p224_p6 = scmp.lt.u32.totalorder %s220_s23, %s325_s3 }
  0xfc   :  { %p226_p7 = pnand %p224_p6, %p221_p5 }
  0xfe   :  { %229 = shalt.err (!%p226_p7)
}
  0xff   :  { %122 = dma.vmem_to_hbm [thread:$0]  %s120_s21, 32, %s325_s3, [#allocation3]  }
 0x100   :  { %230 = dma.done.wait [#allocation3], 32  }
 0x101   :  { %231 = vsyncadd [#allocation3], 4294967264 }
 0x102   :  { %126 = vsyncpa [#allocation3], 1 }

</bundles_post_ra>
